<compile_context>
chip_gen: v7x
topology: tpu7x:2x2x1
jax: 0.10.0
libtpu: 0.0.40
codegen_flags: <defaults>
</compile_context>

<pallas_src>
import functools

import jax
import jax.numpy as jnp
from jax.experimental import pallas as pl
from jax.experimental.pallas import tpu as pltpu


# ----------------------------------------------------------------------------
# Kernels
# ----------------------------------------------------------------------------

def _layernorm_kernel(x_ref, w_ref, b_ref, o_ref, *, eps):
    # x_ref: (block_rows, C); w_ref / b_ref: (1, C), already f32.
    x = x_ref[...].astype(jnp.float32)
    mean = jnp.mean(x, axis=-1, keepdims=True)
    c = x - mean
    # PyTorch module uses c.pow(2).mean(...) -> biased variance (no Bessel).
    var = jnp.mean(c * c, axis=-1, keepdims=True)
    y = c * jax.lax.rsqrt(var + eps)
    # Single fused store: scale then bias (module order), no extra output copy.
    o_ref[...] = (y * w_ref[...] + b_ref[...]).astype(o_ref.dtype)


def _layernorm_packed_kernel(x_ref, m_ref, w_ref, b_ref, o_ref, *, eps):
    # Lane-packed path: g = 128 // C original rows share one 128-lane row.
    # m_ref is a (P, P) block-diagonal averaging matrix with M[i, j] = 1/C when
    # i and j belong to the same C-wide segment, so x @ M broadcasts each
    # segment's mean back across that segment (and (c*c) @ M the variance).
    x = x_ref[...].astype(jnp.float32)
    m = m_ref[...]
    mean = jnp.dot(x, m, preferred_element_type=jnp.float32)
    c = x - mean
    var = jnp.dot(c * c, m, preferred_element_type=jnp.float32)
    y = c * jax.lax.rsqrt(var + eps)
    o_ref[...] = (y * w_ref[...] + b_ref[...]).astype(o_ref.dtype)


# ----------------------------------------------------------------------------
# Heuristics
# ----------------------------------------------------------------------------

def _round_up(v, m):
    return ((v + m - 1) // m) * m


def _tpu_vmem_capacity_bytes():
    """Per-TensorCore VMEM capacity; conservative 64 MiB fallback (v7x)."""
    try:
        info = pltpu.get_tpu_info()
        cap = getattr(info, "vmem_capacity_bytes", None)
        if cap:
            return int(cap)
    except Exception:
        pass
    return 64 * 1024 * 1024


def _pick_block_rows(rows, width, itemsize, vmem_budget_bytes, two_cores):
    """Largest 8-aligned row tile that fits the VMEM budget.

    Per-row cost model (tightened vs. previous version):
      input + output pipeline buffers, double-buffered : 4 * itemsize * width
      in-kernel f32 working copies (x, c, c*c, y, affine broadcast): ~5*4*width
    """
    bytes_per_row = width * (4 * itemsize + 5 * 4)
    br = vmem_budget_bytes // max(bytes_per_row, 1)
    # 512-1024 rows already sit at the 85%+ HBM-roofline plateau; cap at 1024
    # to keep headroom under v7x's 64 MiB/TC VMEM.
    br = min(br, 1024)
    br = min(br, _round_up(rows, 8))
    br = max(8, (br // 8) * 8)

    if two_cores and rows > 2 * 8:
        # v7x megacore: keep >= ~4 grid steps (2 per TensorCore) so the
        # "parallel" axis shards across both TCs, and prefer an even count.
        br = min(br, max(8, _round_up(pl.cdiv(rows, 4), 8)))
        steps = pl.cdiv(rows, br)
        if steps > 1 and steps % 2 == 1:
            br = max(8, _round_up(pl.cdiv(rows, steps + 1), 8))
    return br


# ----------------------------------------------------------------------------
# Wrapper
# ----------------------------------------------------------------------------

def layernorm_general(x, weight, bias, *, eps=1e-5, block_rows=None):
    """LayerNormGeneral forward: normalize over last dim, then scale + bias.

    x:      (B, N, C) channels-last
    weight: (C,)
    bias:   (C,)
    """
    B, N, C = x.shape
    rows = B * N
    itemsize = jnp.dtype(x.dtype).itemsize

    vmem_cap = _tpu_vmem_capacity_bytes()
    # <= ~80 MiB per core -> v7x-like part (64 MiB/TC, 2 TensorCores);
    # otherwise v5e/v6e-like (128 MiB VMEM, 1 TensorCore).
    two_cores = vmem_cap <= 80 * 1024 * 1024
    vmem_limit = (48 if two_cores else 96) * 1024 * 1024
    vmem_budget = int(0.6 * vmem_limit)   # headroom for Mosaic internal scratch

    x2d = x.reshape(rows, C)

    # Lane-packing path: when C is a small divisor of 128, fold g = 128//C rows
    # into one 128-lane row so loads/stores are lane-dense (unmasked vst).
    use_packed = (C < 128) and (128 % C == 0) and (rows % (128 // C) == 0)

    if use_packed:
        g = 128 // C
        P = g * C                              # = 128
        rows_p = rows // g
        x2d = x2d.reshape(rows_p, P)           # free row-major reshape
        w_row = jnp.tile(weight.astype(jnp.float32), g).reshape(1, P)
        b_row = jnp.tile(bias.astype(jnp.float32), g).reshape(1, P)
        seg = jnp.arange(P, dtype=jnp.int32) // C
        m_mat = (seg[:, None] == seg[None, :]).astype(jnp.float32) / float(C)

        if block_rows is None:
            block_rows = _pick_block_rows(rows_p, P, itemsize, vmem_budget,
                                          two_cores)
        grid = (pl.cdiv(rows_p, block_rows),)

        cost = pl.CostEstimate(
            flops=int(2 * 2 * rows_p * P * P + 5 * rows * C),
            transcendentals=int(rows),
            bytes_accessed=int(2 * rows * C * itemsize + (P * P + 2 * P) * 4))

        out2d = pl.pallas_call(
            functools.partial(_layernorm_packed_kernel, eps=eps),
            out_shape=jax.ShapeDtypeStruct((rows_p, P), x.dtype),
            grid_spec=pltpu.PrefetchScalarGridSpec(
                num_scalar_prefetch=0,
                grid=grid,
                in_specs=[
                    pl.BlockSpec((block_rows, P), lambda i: (i, 0)),  # x rows
                    pl.BlockSpec((P, P), lambda i: (0, 0)),           # seg-avg M
                    pl.BlockSpec((1, P), lambda i: (0, 0)),           # weight
                    pl.BlockSpec((1, P), lambda i: (0, 0)),           # bias
                ],
                out_specs=pl.BlockSpec((block_rows, P), lambda i: (i, 0)),
            ),
            compiler_params=pltpu.CompilerParams(
                dimension_semantics=("parallel",),
                vmem_limit_bytes=vmem_limit,
            ),
            cost_estimate=cost,
        )(x2d, m_mat, w_row, b_row)
        return out2d.reshape(B, N, C)

    # Standard path: each row normalized over the full C axis (resident in VMEM).
    w2d = weight.reshape(1, C).astype(jnp.float32)
    b2d = bias.reshape(1, C).astype(jnp.float32)

    if block_rows is None:
        block_rows = _pick_block_rows(rows, C, itemsize, vmem_budget, two_cores)

    # No pad / slice: Pallas masks the boundary block (garbage rows in the tail
    # block are independent and dropped on the masked store).
    grid = (pl.cdiv(rows, block_rows),)

    cost = pl.CostEstimate(
        flops=int(7 * rows * C),
        transcendentals=int(rows),
        bytes_accessed=int(2 * rows * C * itemsize + 2 * C * 4))

    out2d = pl.pallas_call(
        functools.partial(_layernorm_kernel, eps=eps),
        out_shape=jax.ShapeDtypeStruct((rows, C), x.dtype),
        grid_spec=pltpu.PrefetchScalarGridSpec(
            num_scalar_prefetch=0,
            grid=grid,
            in_specs=[
                pl.BlockSpec((block_rows, C), lambda i: (i, 0)),  # x rows
                pl.BlockSpec((1, C), lambda i: (0, 0)),           # weight
                pl.BlockSpec((1, C), lambda i: (0, 0)),           # bias
            ],
            out_specs=pl.BlockSpec((block_rows, C), lambda i: (i, 0)),
        ),
        compiler_params=pltpu.CompilerParams(
            dimension_semantics=("parallel",),
            vmem_limit_bytes=vmem_limit,
        ),
        cost_estimate=cost,
    )(x2d, w2d, b2d)
    return out2d.reshape(B, N, C)


# ----------------------------------------------------------------------------
# Reference + self-test
# ----------------------------------------------------------------------------

def _reference(x, weight, bias, eps=1e-5):
    xf = x.astype(jnp.float32)
    c = xf - jnp.mean(xf, axis=-1, keepdims=True)
    s = jnp.mean(c * c, axis=-1, keepdims=True)
    y = c / jnp.sqrt(s + eps)
    y = y * weight + bias
    return y.astype(x.dtype)


if __name__ == "__main__":
    key = jax.random.PRNGKey(0)

    # Test 1: lane-dense C (multiple of 128), rows divisible by 8.
    B, N, C = 2, 8, 128
    x = jax.random.normal(key, (B, N, C), dtype=jnp.float32)
    weight = jnp.ones((C,), dtype=jnp.float32)   # nn.Parameter(torch.ones(C))
    bias = jnp.zeros((C,), dtype=jnp.float32)    # nn.Parameter(torch.zeros(C))
    out = jax.block_until_ready(layernorm_general(x, weight, bias, eps=1e-5))
    ref = _reference(x, weight, bias, eps=1e-5)
    assert out.shape == (B, N, C)
    assert jnp.allclose(out, ref, atol=1e-5, rtol=1e-5), "mismatch (C=128)"

    # Test 2: non-divisible row count -> boundary block masking (no pad/slice).
    B2, N2, C2 = 3, 7, 128
    x2 = jax.random.normal(jax.random.PRNGKey(1), (B2, N2, C2), dtype=jnp.float32)
    w2 = jnp.ones((C2,), dtype=jnp.float32)
    b2 = jnp.zeros((C2,), dtype=jnp.float32)
    out2 = jax.block_until_ready(layernorm_general(x2, w2, b2, eps=1e-5))
    ref2 = _reference(x2, w2, b2, eps=1e-5)
    assert jnp.allclose(out2, ref2, atol=1e-5, rtol=1e-5), "mismatch (ragged rows)"

    # Test 3: small C -> lane-packed path (g = 128 // C rows per 128-lane row).
    B3, N3, C3 = 2, 16, 32
    x3 = jax.random.normal(jax.random.PRNGKey(2), (B3, N3, C3), dtype=jnp.float32)
    w3 = jnp.ones((C3,), dtype=jnp.float32)
    b3 = jnp.zeros((C3,), dtype=jnp.float32)
    out3 = jax.block_until_ready(layernorm_general(x3, w3, b3, eps=1e-5))
    ref3 = _reference(x3, w3, b3, eps=1e-5)
    assert jnp.allclose(out3, ref3, atol=1e-5, rtol=1e-5), "mismatch (packed C=32)"

    print("KERNEL_OK")
</pallas_src>

<mosaic_0001>
module attributes {stable_mosaic.version = 11 : i64} {
  func.func @_layernorm_kernel(%arg0: i32, %arg1: memref<16x128xf32, #tpu.memory_space<vmem>>, %arg2: memref<1x128xf32, #tpu.memory_space<vmem>>, %arg3: memref<1x128xf32, #tpu.memory_space<vmem>>, %arg4: memref<16x128xf32, #tpu.memory_space<vmem>>) attributes {dimension_semantics = [#tpu.dimension_semantics<parallel>], iteration_bounds = array<i64: 1>, scalar_prefetch = 0 : i64, scratch_operands = 0 : i64, tpu.core_type = #tpu.core_type<tc>, window_params = [{transform_indices = @transform_0, window_bounds = array<i64: 16, 128>}, {pipeline_mode = #tpu.pipeline_mode<synchronous>, transform_indices = @transform_1, window_bounds = array<i64: 1, 128>}, {pipeline_mode = #tpu.pipeline_mode<synchronous>, transform_indices = @transform_2, window_bounds = array<i64: 1, 128>}, {transform_indices = @transform_3, window_bounds = array<i64: 16, 128>}]} {
    %c0 = arith.constant 0 : index
    %c0_0 = arith.constant 0 : index
    %0 = vector.load %arg1[%c0, %c0_0] : memref<16x128xf32, #tpu.memory_space<vmem>>, vector<16x128xf32>
    %cst = arith.constant dense<0.000000e+00> : vector<16xf32>
    %1 = vector.multi_reduction <add>, %0, %cst [1] : vector<16x128xf32> to vector<16xf32>
    %2 = vector.shape_cast %1 : vector<16xf32> to vector<16x1xf32>
    %cst_1 = arith.constant 1.280000e+02 : f32
    %3 = vector.broadcast %cst_1 : f32 to vector<16x1xf32>
    %4 = arith.divf %2, %3 : vector<16x1xf32>
    %5 = vector.broadcast %4 : vector<16x1xf32> to vector<16x128xf32>
    %6 = arith.subf %0, %5 : vector<16x128xf32>
    %7 = arith.mulf %6, %6 : vector<16x128xf32>
    %cst_2 = arith.constant dense<0.000000e+00> : vector<16xf32>
    %8 = vector.multi_reduction <add>, %7, %cst_2 [1] : vector<16x128xf32> to vector<16xf32>
    %9 = vector.shape_cast %8 : vector<16xf32> to vector<16x1xf32>
    %cst_3 = arith.constant 1.280000e+02 : f32
    %10 = vector.broadcast %cst_3 : f32 to vector<16x1xf32>
    %11 = arith.divf %9, %10 : vector<16x1xf32>
    %cst_4 = arith.constant 9.99999974E-6 : f32
    %12 = vector.broadcast %cst_4 : f32 to vector<16x1xf32>
    %13 = arith.addf %11, %12 : vector<16x1xf32>
    %14 = math.rsqrt %13 : vector<16x1xf32>
    %15 = vector.broadcast %14 : vector<16x1xf32> to vector<16x128xf32>
    %16 = arith.mulf %6, %15 : vector<16x128xf32>
    %c0_5 = arith.constant 0 : index
    %c0_6 = arith.constant 0 : index
    %17 = vector.load %arg2[%c0_5, %c0_6] : memref<1x128xf32, #tpu.memory_space<vmem>>, vector<1x128xf32>
    %18 = vector.broadcast %17 : vector<1x128xf32> to vector<16x128xf32>
    %19 = arith.mulf %16, %18 : vector<16x128xf32>
    %c0_7 = arith.constant 0 : index
    %c0_8 = arith.constant 0 : index
    %20 = vector.load %arg3[%c0_7, %c0_8] : memref<1x128xf32, #tpu.memory_space<vmem>>, vector<1x128xf32>
    %21 = vector.broadcast %20 : vector<1x128xf32> to vector<16x128xf32>
    %22 = arith.addf %19, %21 : vector<16x128xf32>
    %c0_9 = arith.constant 0 : index
    %c0_10 = arith.constant 0 : index
    %23 = vector.load %arg4[%c0_9, %c0_10] : memref<16x128xf32, #tpu.memory_space<vmem>>, vector<16x128xf32>
    tpu.vector_store %arg4[%c0_9, %c0_10], %22 {strides = array<i32>} : memref<16x128xf32, #tpu.memory_space<vmem>>, vector<16x128xf32>,
    return
  }
  func.func @transform_0(%arg0: i32) -> (i32, i32) {
    %c0_i32 = arith.constant 0 : i32
    %c0_i32_0 = arith.constant 0 : i32
    return %arg0, %c0_i32 : i32, i32
  }
  func.func @transform_1(%arg0: i32) -> (i32, i32) {
    %c0_i32 = arith.constant 0 : i32
    %c0_i32_0 = arith.constant 0 : i32
    %c0_i32_1 = arith.constant 0 : i32
    return %c0_i32, %c0_i32_0 : i32, i32
  }
  func.func @transform_2(%arg0: i32) -> (i32, i32) {
    %c0_i32 = arith.constant 0 : i32
    %c0_i32_0 = arith.constant 0 : i32
    %c0_i32_1 = arith.constant 0 : i32
    return %c0_i32, %c0_i32_0 : i32, i32
  }
  func.func @transform_3(%arg0: i32) -> (i32, i32) {
    %c0_i32 = arith.constant 0 : i32
    %c0_i32_0 = arith.constant 0 : i32
    return %arg0, %c0_i32 : i32, i32
  }
}

</mosaic_0001>

<bundles_post_ra>
// kernel: tpu_custom_call.1
= control target key start
LH: loop header
LB: loop body
LE: loop exit
PB: predicated region body
PF: predicated region fallthrough
CT: control target
= control target key end

     0   :  { %8 = vsyncpa [#allocation3], 0  ;;  %s209_s0 = inlined_call_operand.hbm [shape: f32[16,128], index: 0, kind: input, shape index: {}]   ;;  %s210_s1 = inlined_call_operand.vmem [shape: f32[1,128], index: 1, kind: input, shape index: {}]   ;;  %s211_s2 = inlined_call_operand.vmem [shape: f32[1,128], index: 2, kind: input, shape index: {}]   ;;  %s212_s3 = inlined_call_operand.hbm [shape: f32[16,128], index: 3, kind: output, shape index: {}]  }
   0x1   :  { %9 = vsyncpa [#allocation4], 0  ;;  %s149_s12 = smov [#allocation2]   ;;  %s101_s16 = scalar_lea.hbm %s209_s0, 256 }
   0x2   :  { %s15_s13 = sshll.u32 %s149_s12, 4  ;;  %p102_p0 = scmp.ne.s32.totalorder %s209_s0, %s101_s16  ;;  %s16_s13 = int_to_ptr.vmem [resolvable:$true] %s15_s13 }
   0x3   :  { %p105_p1 = scmp.lt.u32.totalorder %s101_s16, %s209_s0 }
   0x5   :  { %p107_p2 = pnand %p105_p1, %p102_p0 }
   0x7   :  { %110 = shalt.err (!%p107_p2)
}
   0x8   :  { %s111_s21 = scalar_lea.vmem %s16_s13, 256  ;;  %p116_p4 = scmp.lt.s32.totalorder %s16_s13, %s16_s13 }
   0x9   :  { %p112_p3 = scmp.ne.s32.totalorder %s16_s13, %s111_s21  ;;  %p117_p5 = scmp.lt.s32.totalorder %s111_s21, %s111_s21 }
   0xb   :  { %p118_p6 = por %p117_p5, %p116_p4 }
   0xd   :  { %p119_p7 = pnand %p118_p6, %p112_p3 }
   0xf   :  { %122 = shalt.err (!%p119_p7)
}
  0x10   :  { %s150_s22 = smov 128   ;;  %s151_s23 = smov 8  }
  0x11   :  { %21 = dma.hbm_to_vmem [thread:$0]  %s209_s0, 256, %s16_s13, [#allocation3], %s150_s22, %s150_s22, %s151_s23  }
  0x12   :  { %145 = dma.done.wait [#allocation3], 256  }
  0x13   :  { %146 = vsyncadd [#allocation3], 4294967040  ;;  %v29_v0 = vld [vmem:[#allocation2] sm:$0xff]  ;;  %v30_v1 = vld [vmem:[#allocation2 + $0x8] sm:$0xff]  ;;  %s152_s29 = smov [#allocation5]  }
  0x14   :  { %31 = vadd.xlane.f32.xlu0 %v29_v0  ;;  %v91_v17 = vld [vmem:[%s210_s1] ss:$0 sm:$0xff]  ;;  %s79_s30 = sshll.u32 %s152_s29, 4  ;;  %s80_s30 = int_to_ptr.vmem [resolvable:$true] %s79_s30 }
  0x15   :  { %v92_v19 = vld [vmem:[%s211_s2] ss:$0 sm:$0xff]  ;;  %s123_s4 = scalar_lea.vmem %s80_s30, 256  ;;  %p128_p9 = scmp.lt.s32.totalorder %s80_s30, %s80_s30 }
  0x16   :  { %p124_p8 = scmp.ne.s32.totalorder %s80_s30, %s123_s4  ;;  %p129_p10 = scmp.lt.s32.totalorder %s123_s4, %s123_s4 }
  0x18   :  { %33 = vadd.xlane.f32.xlu0 %v30_v1  ;;  %p130_p11 = por %p129_p10, %p128_p9 }
  0x1a   :  { %p131_p12 = pnand %p130_p11, %p124_p8 }
  0xa1   :  { %v32_v2 = vpop.xlane.xlu0 %31 }
  0xa2   :  { %v36_v3 = vmul.f32 0.0078125, %v32_v2 }
  0xa4   :  { %v38_v4 = vsub.f32 %v29_v0, %v36_v3 }
  0xa5   :  { %v34_v5 = vpop.xlane.xlu0 %33 }
  0xa6   :  { %v37_v6 = vmul.f32 0.0078125, %v34_v5  ;;  %v40_v7 = vmul.f32 %v38_v4, %v38_v4 }
  0xa8   :  { %v39_v8 = vsub.f32 %v30_v1, %v37_v6  ;;  %42 = vadd.xlane.f32.xlu1 %v40_v7 }
  0xaa   :  { %v41_v9 = vmul.f32 %v39_v8, %v39_v8 }
  0xac   :  { %44 = vadd.xlane.f32.xlu1 %v41_v9 }
 0x135   :  { %v43_v10 = vpop.xlane.xlu1 %42 }
 0x136   :  { %v46_v11 = vmul.f32 0.0078125, %v43_v10 }
 0x138   :  { %v48_v12 = vadd.f32 1e-05, %v46_v11 }
 0x139   :  { %v45_v13 = vpop.xlane.xlu1 %44 }
 0x13a   :  { %97 = vrsqrt.f32 %v48_v12  ;;  %v47_v14 = vmul.f32 0.0078125, %v45_v13 }
 0x13c   :  { %v49_v15 = vadd.f32 1e-05, %v47_v14 }
 0x13e   :  { %99 = vrsqrt.f32 %v49_v15 }
 0x144   :  { %v98_v16 = vpop.eup %97 }
 0x145   :  { %v52_v18 = vmul.f32 %v98_v16, %v38_v4 }
 0x147   :  { %v61_v20 = vmul.f32 %v91_v17, %v52_v18 }
 0x148   :  { %v100_v21 = vpop.eup %99 }
 0x149   :  { %v53_v22 = vmul.f32 %v100_v21, %v39_v8  ;;  %v70_v23 = vadd.f32 %v92_v19, %v61_v20 }
 0x14b   :  { %v62_v24 = vmul.f32 %v91_v17, %v53_v22  ;;  %72 = vst [vmem:[#allocation5] sm:$0xff] %v70_v23 }
 0x14d   :  { %v71_v25 = vadd.f32 %v92_v19, %v62_v24 }
 0x14f   :  { %73 = vst [vmem:[#allocation5 + $0x8] sm:$0xff] %v71_v25 }
 0x150   :  { %134 = shalt.err (!%p131_p12)
}
 0x151   :  { %s135_s5 = scalar_lea.hbm %s212_s3, 256 }
 0x152   :  { %p136_p13 = scmp.ne.s32.totalorder %s212_s3, %s135_s5  ;;  %p139_p0 = scmp.lt.u32.totalorder %s135_s5, %s212_s3 }
 0x154   :  { %p141_p1 = pnand %p139_p0, %p136_p13 }
 0x156   :  { %144 = shalt.err (!%p141_p1)
}
 0x157   :  { %85 = dma.vmem_to_hbm [thread:$0]  %s80_s30, 256, %s212_s3, [#allocation4], %s150_s22, %s150_s22, %s151_s23  }
 0x158   :  { %147 = dma.done.wait [#allocation4], 256  }
 0x159   :  { %148 = vsyncadd [#allocation4], 4294967040 }
 0x15a   :  { %89 = vsyncpa [#allocation3], 1 }
 0x15b   :  { %90 = vsyncpa [#allocation4], 1 }

</bundles_post_ra>
